<compile_context>
chip_gen: v5e
topology: v5e:2x2
jax: 0.10.0
libtpu: 0.0.40
codegen_flags: <defaults>
</compile_context>

<pallas_src>
import functools

import jax
import jax.numpy as jnp
import numpy as np
from jax.experimental import pallas as pl
from jax.experimental.pallas import tpu as pltpu

LANE = 128      # TPU lane width (output / K-tile alignment)
SUBLANE = 8     # sublane width (batch-tile alignment)


def _round_up(x, m):
    return (x + m - 1) // m * m


def _vmem_budget_and_cap():
    """Per-generation VMEM budget (bytes) and physical capacity."""
    try:
        cap = int(pltpu.get_tpu_info().vmem_capacity_bytes)
    except Exception:
        cap = 64 * 1024 * 1024          # conservative (v7x-sized) fallback
    budget = min(int(cap * 0.60), 80 * 1024 * 1024)
    return budget, cap


# ---------------------------------------------------------------------------
# Kernel
# ---------------------------------------------------------------------------
def _linear_kernel(x_ref, wt_ref, b_ref, o_ref, acc_ref, *, single_k):
    # x_ref : (tb, tk)   activation tile (input dtype, e.g. f32)
    # wt_ref: (tk, tn)   pre-transposed weight tile (bf16 or f32)
    # b_ref : (1, tn)    f32 bias row tile
    # o_ref : (tb, tn)   output tile (f32 by default)
    # acc_ref: (tb, tn)  f32 accumulator scratch (used when K is tiled)
    x = x_ref[...].astype(wt_ref.dtype)     # in-kernel cast; no extra HBM pass
    partial = jnp.dot(x, wt_ref[...], preferred_element_type=jnp.float32)

    if single_k:
        # Single K tile: write output directly, skip the scratch round-trip.
        o_ref[...] = (partial + b_ref[...].astype(jnp.float32)).astype(o_ref.dtype)
    else:
        k = pl.program_id(2)

        @pl.when(k == 0)
        def _init():
            acc_ref[...] = jnp.zeros_like(acc_ref)

        acc_ref[...] += partial

        @pl.when(k == pl.num_programs(2) - 1)
        def _store():
            o_ref[...] = (acc_ref[...]
                          + b_ref[...].astype(jnp.float32)).astype(o_ref.dtype)


def _maybe_single_buffered_spec(shape, index_map, single_buffer):
    """BlockSpec; requests 1-deep buffering for grid-invariant operands."""
    if single_buffer:
        try:
            return pl.BlockSpec(shape, index_map, pipeline_mode=pl.Buffered(1))
        except Exception:   # older jax without pipeline_mode support
            pass
    return pl.BlockSpec(shape, index_map)


# ---------------------------------------------------------------------------
# Parameter prep (do once at init / load time, NOT per forward)
# ---------------------------------------------------------------------------
def prepare_lin_params(weight, bias=None, *, compute_dtype=jnp.bfloat16):
    """weight: (N, K) PyTorch nn.Linear layout.

    Returns (wt, b2, N): wt is (K, N_pad) in `compute_dtype` (bf16 by default),
    b2 is (1, N_pad) f32, N_pad = round_up(N, 128) so output stores are
    lane-dense. Padded weight/bias columns are exactly zero.
    """
    N, K = weight.shape
    N_pad = _round_up(N, LANE)
    wt = weight.T                                    # transpose hoisted out of fwd
    if N_pad != N:
        wt = jnp.pad(wt, ((0, 0), (0, N_pad - N)))
    if bias is None:
        b = jnp.zeros((N_pad,), jnp.float32)
    else:
        b = jnp.asarray(bias, jnp.float32)
        if N_pad != N:
            b = jnp.pad(b, (0, N_pad - N))
    if compute_dtype is not None:
        wt = wt.astype(compute_dtype)
    return wt, b.reshape(1, N_pad).astype(jnp.float32), N


# ---------------------------------------------------------------------------
# Tile selection
# ---------------------------------------------------------------------------
def _shrink(val, floor, align):
    nv = max(floor, (val // 2) // align * align)
    return nv if 0 < nv < val else val


def _select_tiles(B, K, N_pad, x_isz, w_isz, budget, tb, tn, tk_target):
    tb = B if B <= tb else max(SUBLANE, tb // SUBLANE * SUBLANE)
    tn = N_pad if N_pad <= tn else max(LANE, tn // LANE * LANE)
    tk_target = max(LANE, tk_target // LANE * LANE)

    def footprint(tb_, tn_, tk_):
        n_n = pl.cdiv(N_pad, tn_)
        n_k = pl.cdiv(K, tk_)
        w_bufs = 1 if (n_n == 1 and n_k == 1) else 2
        b_bufs = 1 if n_n == 1 else 2
        return (2 * tb_ * tk_ * x_isz            # x tiles (double buffered)
                + w_bufs * tk_ * tn_ * w_isz     # weight tiles
                + b_bufs * tn_ * 4               # bias tiles
                + 2 * tb_ * tn_ * 4              # output tiles
                + tb_ * tn_ * 4)                 # f32 accumulator scratch

    tk = K
    if footprint(tb, tn, tk) > budget:
        # Engage K tiling before shrinking tn below 256 (keeps MXU N full and
        # bounds the weight/x footprint independently of input_size).
        tk = min(K, tk_target)
        for (shrinker, floor, align) in (("tk", 256, LANE), ("tb", 64, SUBLANE),
                                         ("tn", 256, LANE), ("tk", 128, LANE),
                                         ("tn", 128, LANE), ("tb", 8, SUBLANE)):
            while footprint(tb, tn, tk) > budget:
                cur = {"tb": tb, "tn": tn, "tk": tk}[shrinker]
                nv = _shrink(cur, floor, align)
                if nv == cur:
                    break
                if shrinker == "tb":
                    tb = nv
                elif shrinker == "tn":
                    tn = nv
                else:
                    tk = nv
    return tb, tn, tk, footprint(tb, tn, tk)


def _snap_tk(K, tk):
    """K tiles must be 128-aligned (x block lane dim) unless tk == K."""
    if tk >= K:
        return K, False
    if K % tk == 0:
        return tk, False
    for m in range(tk // LANE, 0, -1):
        d = m * LANE
        if K % d == 0:
            return d, False
    return tk, True     # no 128-aligned divisor of K: zero-pad K instead


# ---------------------------------------------------------------------------
# Forward
# ---------------------------------------------------------------------------
def lin_forward(x, wt, b2, num_classes=None, *, tb=256, tn=512, tk=1024,
                trim_output=True, out_dtype=None, vmem_budget_bytes=None,
                interpret=False):
    """y = x @ weight.T + bias  (nn.Linear forward).

    x : (B, K);  wt : (K, N_pad) pre-transposed/padded (see prepare_lin_params);
    b2 : (1, N_pad) f32.  Returns (B, num_classes) (or (B, N_pad) if
    trim_output=False — padded columns are exactly zero).
    """
    B, K = x.shape
    K_w, N_pad = wt.shape
    assert K == K_w, f"x feature dim {K} != prepared weight dim {K_w}"
    if num_classes is None:
        num_classes = N_pad
    out_dtype = x.dtype if out_dtype is None else out_dtype

    x_isz = jnp.dtype(x.dtype).itemsize
    w_isz = jnp.dtype(wt.dtype).itemsize
    budget, cap = _vmem_budget_and_cap()
    if vmem_budget_bytes is not None:
        budget = int(vmem_budget_bytes)

    tb, tn, tk, vmem_need = _select_tiles(B, K, N_pad, x_isz, w_isz, budget,
                                          tb, tn, tk)
    if vmem_need > budget:
        raise ValueError(
            f"lin_forward: tile plan needs {vmem_need} B of VMEM > budget "
            f"{budget} B (B={B}, K={K}, N_pad={N_pad})")

    # Snap the K tile to a 128-aligned divisor of K; otherwise zero-pad K.
    tk, need_pad = _snap_tk(K, tk)
    if need_pad:
        # TODO(synk): rare path (huge K with no 128-aligned divisor); padding
        # the weight here costs one extra HBM copy per call.
        K_pad_dim = _round_up(K, tk)
        x = jnp.pad(x, ((0, 0), (0, K_pad_dim - K)))
        wt = jnp.pad(wt, ((0, K_pad_dim - K), (0, 0)))
        K = K_pad_dim

    n_b = pl.cdiv(B, tb)
    n_n = pl.cdiv(N_pad, tn)
    n_k = pl.cdiv(K, tk)

    # v7x: make sure both TensorCores get at least one block along a parallel
    # axis (splitting only ever shrinks the footprint).
    if n_b * n_n == 1:
        if N_pad >= 2 * LANE:
            tn = _round_up(pl.cdiv(N_pad, 2), LANE)
            n_n = pl.cdiv(N_pad, tn)
        elif B >= 2 * SUBLANE:
            tb = _round_up(pl.cdiv(B, 2), SUBLANE)
            n_b = pl.cdiv(B, tb)

    weight_invariant = (n_n == 1 and n_k == 1)
    bias_invariant = (n_n == 1)

    # Operand-size-aware grid ordering: when the weight is the larger operand
    # put the batch axis innermost of the two parallel axes so the weight block
    # index is constant along it (its DMA is elided -> streamed once from HBM).
    weight_restream = (n_b - 1) * K * N_pad * w_isz
    x_restream = (n_n - 1) * B * K * x_isz
    batch_inner = weight_restream > x_restream

    if batch_inner:
        grid = (n_n, n_b, n_k)
        x_map = lambda j, i, k: (i, k)
        w_map = lambda j, i, k: (k, j)
        b_map = lambda j, i, k: (0, j)
        o_map = lambda j, i, k: (i, j)
    else:
        grid = (n_b, n_n, n_k)
        x_map = lambda i, j, k: (i, k)
        w_map = lambda i, j, k: (k, j)
        b_map = lambda i, j, k: (0, j)
        o_map = lambda i, j, k: (i, j)

    in_specs = [
        pl.BlockSpec((tb, tk), x_map),                                   # x
        _maybe_single_buffered_spec((tk, tn), w_map, weight_invariant),  # weight
        _maybe_single_buffered_spec((1, tn), b_map, bias_invariant),     # bias
    ]

    flops = 2 * B * K * N_pad
    bytes_accessed = (B * K * x_isz + K * N_pad * w_isz + N_pad * 4
                      + B * N_pad * jnp.dtype(out_dtype).itemsize)

    out = pl.pallas_call(
        functools.partial(_linear_kernel, single_k=(n_k == 1)),
        out_shape=jax.ShapeDtypeStruct((B, N_pad), out_dtype),
        grid_spec=pltpu.PrefetchScalarGridSpec(
            num_scalar_prefetch=0,
            grid=grid,
            in_specs=in_specs,
            out_specs=pl.BlockSpec((tb, tn), o_map),
            scratch_shapes=[pltpu.VMEM((tb, tn), jnp.float32)],
        ),
        compiler_params=pltpu.CompilerParams(
            dimension_semantics=("parallel", "parallel", "arbitrary"),
            vmem_limit_bytes=int(min(max(vmem_need + (4 << 20), 32 << 20),
                                     int(cap * 0.94))),
        ),
        cost_estimate=pl.CostEstimate(flops=int(flops), transcendentals=0,
                                      bytes_accessed=int(bytes_accessed)),
        interpret=interpret,
    )(x, wt, b2)

    if trim_output and num_classes != N_pad:
        # Padded columns are exactly zero; pass trim_output=False when the
        # consumer can take the (B, N_pad) slab to avoid this extra HBM pass.
        out = out[:, :num_classes]
    return out


# ---------------------------------------------------------------------------
# Parameter init (re-implements Lin.reinit_parameters)
# ---------------------------------------------------------------------------
def init_lin_params(key, input_size, num_classes, init_distrib="uniform",
                    add_bias=True):
    stddev = 1.0 / np.sqrt(input_size)
    kw, kb = jax.random.split(key)
    if init_distrib == "normal":
        weight = stddev * jax.random.normal(kw, (num_classes, input_size),
                                            dtype=jnp.float32)
        bias = (stddev * jax.random.normal(kb, (num_classes,), dtype=jnp.float32)
                if add_bias else jnp.zeros((num_classes,), jnp.float32))
    else:  # 'uniform'
        weight = jax.random.uniform(kw, (num_classes, input_size),
                                    minval=-stddev, maxval=stddev,
                                    dtype=jnp.float32)
        bias = (jax.random.uniform(kb, (num_classes,), minval=-stddev,
                                   maxval=stddev, dtype=jnp.float32)
                if add_bias else jnp.zeros((num_classes,), jnp.float32))
    return weight, bias


if __name__ == "__main__":
    key = jax.random.PRNGKey(0)
    kx1, kp1, kx2, kp2, kx3, kp3 = jax.random.split(key, 6)

    # 1) Small shapes per the module spec — exact f32 weight path.
    batch, input_size, num_classes = 8, 32, 16
    x = jax.random.normal(kx1, (batch, input_size), dtype=jnp.float32)
    w, b = init_lin_params(kp1, input_size, num_classes, "uniform", True)
    wt, b2, n_out = prepare_lin_params(w, b, compute_dtype=jnp.float32)
    y = jax.block_until_ready(lin_forward(x, wt, b2, n_out))
    np.testing.assert_allclose(np.asarray(y), np.asarray(x @ w.T + b),
                               rtol=1e-5, atol=1e-5)

    # 2) Default bf16-weight path; exercises batch tiling (remainder block),
    #    N padding, weight streaming and the operand-size-aware grid order.
    B2, K2, N2 = 260, 96, 600
    x2 = jax.random.normal(kx2, (B2, K2), dtype=jnp.float32)
    w2, bias2 = init_lin_params(kp2, K2, N2, "normal", True)
    wt2, b22, n2 = prepare_lin_params(w2, bias2)            # bf16 weights
    y2 = jax.block_until_ready(lin_forward(x2, wt2, b22, n2))
    np.testing.assert_allclose(np.asarray(y2), np.asarray(x2 @ w2.T + bias2),
                               rtol=5e-2, atol=5e-2)

    # 3) Force the K-reduction grid axis via a tiny VMEM budget (f32 weights).
    B3, K3, N3 = 64, 1024, 384
    x3 = jax.random.normal(kx3, (B3, K3), dtype=jnp.float32)
    w3, bias3 = init_lin_params(kp3, K3, N3, "uniform", True)
    wt3, b23, n3 = prepare_lin_params(w3, bias3, compute_dtype=jnp.float32)
    y3 = jax.block_until_ready(
        lin_forward(x3, wt3, b23, n3, vmem_budget_bytes=1 << 20))
    np.testing.assert_allclose(np.asarray(y3), np.asarray(x3 @ w3.T + bias3),
                               rtol=1e-3, atol=1e-3)

    print("KERNEL_OK")
</pallas_src>

<mosaic_0001>
module attributes {stable_mosaic.version = 11 : i64} {
  func.func @_linear_kernel(%arg0: i32, %arg1: i32, %arg2: i32, %arg3: memref<8x32xf32, #tpu.memory_space<vmem>>, %arg4: memref<32x128xf32, #tpu.memory_space<vmem>>, %arg5: memref<1x128xf32, #tpu.memory_space<vmem>>, %arg6: memref<8x128xf32, #tpu.memory_space<vmem>>, %arg7: memref<8x128xf32, #tpu.memory_space<vmem>>) attributes {dimension_semantics = [#tpu.dimension_semantics<parallel>, #tpu.dimension_semantics<parallel>, #tpu.dimension_semantics<arbitrary>], iteration_bounds = array<i64: 1, 1, 1>, scalar_prefetch = 0 : i64, scratch_operands = 1 : i64, tpu.core_type = #tpu.core_type<tc>, window_params = [{transform_indices = @transform_0, window_bounds = array<i64: 8, 32>}, {pipeline_mode = #tpu.pipeline_mode<synchronous>, transform_indices = @transform_1, window_bounds = array<i64: 32, 128>}, {pipeline_mode = #tpu.pipeline_mode<synchronous>, transform_indices = @transform_2, window_bounds = array<i64: 1, 128>}, {transform_indices = @transform_3, window_bounds = array<i64: 8, 128>}]} {
    %c0 = arith.constant 0 : index
    %c0_0 = arith.constant 0 : index
    %0 = vector.load %arg3[%c0, %c0_0] : memref<8x32xf32, #tpu.memory_space<vmem>>, vector<8x32xf32>
    %c0_1 = arith.constant 0 : index
    %c0_2 = arith.constant 0 : index
    %1 = vector.load %arg4[%c0_1, %c0_2] : memref<32x128xf32, #tpu.memory_space<vmem>>, vector<32x128xf32>
    %cst = arith.constant dense<0.000000e+00> : vector<8x128xf32>
    %2 = tpu.matmul %0, %1, %cst {dimension_numbers = #tpu.dot_dimension_numbers<[1], [0], [0], [1], [0, 0, 1, 1], [], []>} : vector<8x32xf32>, vector<32x128xf32>, vector<8x128xf32> -> vector<8x128xf32>
    %c0_3 = arith.constant 0 : index
    %c0_4 = arith.constant 0 : index
    %3 = vector.load %arg5[%c0_3, %c0_4] : memref<1x128xf32, #tpu.memory_space<vmem>>, vector<1x128xf32>
    %4 = vector.broadcast %3 : vector<1x128xf32> to vector<8x128xf32>
    %5 = arith.addf %2, %4 : vector<8x128xf32>
    %c0_5 = arith.constant 0 : index
    %c0_6 = arith.constant 0 : index
    %6 = vector.load %arg6[%c0_5, %c0_6] : memref<8x128xf32, #tpu.memory_space<vmem>>, vector<8x128xf32>
    tpu.vector_store %arg6[%c0_5, %c0_6], %5 {strides = array<i32>} : memref<8x128xf32, #tpu.memory_space<vmem>>, vector<8x128xf32>,
    return
  }
  func.func @transform_0(%arg0: i32, %arg1: i32, %arg2: i32) -> (i32, i32) {
    %c0_i32 = arith.constant 0 : i32
    return %arg0, %arg2 : i32, i32
  }
  func.func @transform_1(%arg0: i32, %arg1: i32, %arg2: i32) -> (i32, i32) {
    %c0_i32 = arith.constant 0 : i32
    return %arg2, %arg1 : i32, i32
  }
  func.func @transform_2(%arg0: i32, %arg1: i32, %arg2: i32) -> (i32, i32) {
    %c0_i32 = arith.constant 0 : i32
    %c0_i32_0 = arith.constant 0 : i32
    return %c0_i32, %arg1 : i32, i32
  }
  func.func @transform_3(%arg0: i32, %arg1: i32, %arg2: i32) -> (i32, i32) {
    %c0_i32 = arith.constant 0 : i32
    return %arg0, %arg1 : i32, i32
  }
}

</mosaic_0001>

<bundles_post_ra>
// kernel: tpu_custom_call.1
= control target key start
LH: loop header
LB: loop body
LE: loop exit
PB: predicated region body
PF: predicated region fallthrough
CT: control target
= control target key end

     0   :  { %8 = vsyncpa [#allocation4], 0  ;;  %s219_s0 = inlined_call_operand.hbm [shape: f32[8,32], index: 0, kind: input, shape index: {}]   ;;  %s220_s1 = inlined_call_operand.hbm [shape: f32[32,128], index: 1, kind: input, shape index: {}]   ;;  %s221_s2 = inlined_call_operand.vmem [shape: f32[1,128], index: 2, kind: input, shape index: {}]   ;;  %s222_s3 = inlined_call_operand.hbm [shape: f32[8,128], index: 3, kind: output, shape index: {}]  }
   0x1   :  { %9 = vsyncpa [#allocation7], 0 }
   0x2   :  { %10 = vsyncpa [#allocation5], 0  ;;  %s16_s14 = sshll.u32 %s219_s0, 4  ;;  %s182_s15 = smov [#allocation3]   ;;  %s17_s14 = int_to_ptr.hbm [resolvable:$true] %s16_s14 }
   0x3   :  { %s18_s16 = sshll.u32 %s182_s15, 4  ;;  %s26_s19 = sshll.u32 %s220_s1, 4  ;;  %s19_s16 = int_to_ptr.vmem [resolvable:$true] %s18_s16  ;;  %s27_s19 = int_to_ptr.hbm [resolvable:$true] %s26_s19 }
   0x4   :  { %21 = dma.hbm_to_vmem [thread:$0]  %s17_s14, 128, %s19_s16, [#allocation4]  }
   0x5   :  { %s183_s20 = smov [#allocation6]   ;;  %s184_s22 = smov 128  }
   0x6   :  { %s28_s21 = sshll.u32 %s183_s20, 4  ;;  %s185_s23 = smov 8   ;;  %s29_s21 = int_to_ptr.vmem [resolvable:$true] %s28_s21 }
   0x7   :  { %34 = dma.hbm_to_vmem [thread:$0]  %s27_s19, 512, %s29_s21, [#allocation7], %s184_s22, %s184_s22, %s185_s23  }
   0x8   :  { %176 = dma.done.wait [#allocation4], 128  }
   0x9   :  { %177 = vsyncadd [#allocation4], 4294967168 }
   0xa   :  { %178 = dma.done.wait [#allocation7], 512  }
   0xb   :  { %179 = vsyncadd [#allocation7], 4294966784  ;;  %v49_v0 = vld [vmem:[#allocation6 + $0x18] sm:$0xff]  ;;  %v48_v1 = vld [vmem:[#allocation6 + $0x10] sm:$0xff]  ;;  %vm54_vm0 = vcmask 261120   ;;  %s186_s24 = smov [#allocation8]  }
   0xc   :  { %70 = vmatpush.msra.mxu0 %v49_v0  ;;  %v47_v2 = vld [vmem:[#allocation6 + $0x8] sm:$0xff]  ;;  %v46_v3 = vld [vmem:[#allocation6] sm:$0xff]  ;;  %v45_v4 = vld [vmem:[#allocation3] sm:$0xff]  ;;  %s84_s25 = sshll.u32 %s186_s24, 4  ;;  %s86_s28 = sshll.u32 %s222_s3, 4  ;;  %s85_s25 = int_to_ptr.vmem [resolvable:$true] %s84_s25  ;;  %s87_s28 = int_to_ptr.hbm [resolvable:$true] %s86_s28 }
   0xd   :  { %v103_v5 = vld [vmem:[%s221_s2] ss:$0 sm:$0xff] }
   0xe   :  { %71 = vmatpush.msra.mxu0 %v48_v1 }
  0x10   :  { %72 = vmatpush.msra.mxu0 %v47_v2 }
  0x12   :  { %73 = vmatpush.msra.mxu0 %v46_v3 }
  0x13   :  { %97 = vmatmul.msk.f32.vlgmr.msra.gmra.mxu0 %vm54_vm0, %v45_v4 }
  0x90   :  { %v75_v6 = vpop.f32.mrf.mxu0 }
  0x91   :  { %v76_v7 = vadd.f32 %v103_v5, %v75_v6 }
  0x93   :  { %78 = vst [vmem:[#allocation8] sm:$0xff] %v76_v7 }
  0x94   :  { %89 = dma.vmem_to_hbm [thread:$0]  %s85_s25, 128, %s87_s28, [#allocation5]  }
  0x95   :  { %180 = dma.done.wait [#allocation5], 128  }
  0x96   :  { %181 = vsyncadd [#allocation5], 4294967168 }
  0x97   :  { %94 = vsyncpa [#allocation4], 1 }
  0x98   :  { %95 = vsyncpa [#allocation7], 1 }
  0x99   :  { %96 = vsyncpa [#allocation5], 1 }

</bundles_post_ra>
